<compile_context>
chip_gen: v7x
topology: tpu7x:2x2x1
jax: 0.10.0
libtpu: 0.0.40
codegen_flags: <defaults>
</compile_context>

<pallas_src>
import functools

import jax
import jax.numpy as jnp
from jax import lax
from jax.experimental import pallas as pl
from jax.experimental.pallas import tpu as pltpu

_LANE = 128
_SUBLANE = 8


def _round_up(v, m):
    return ((v + m - 1) // m) * m


def _gelu_exact(x):
    # PyTorch nn.GELU() default = exact erf-based GELU.
    return 0.5 * x * (1.0 + lax.erf(x * (1.0 / jnp.sqrt(2.0).astype(x.dtype))))


def _residual_mlp_kernel(x_ref, w_in_ref, b_in_ref, w_h_ref, b_h_ref,
                         w_out_ref, b_out_ref, o_ref, *, num_hidden_layers):
    x = x_ref[...].astype(jnp.float32)

    # in_layer + GELU
    h = jnp.dot(x, w_in_ref[...], preferred_element_type=jnp.float32) + b_in_ref[...]
    h = _gelu_exact(h)

    # residual hidden layers: h = h + gelu(h @ W_l + b_l)
    for l in range(num_hidden_layers):
        z = jnp.dot(h, w_h_ref[l], preferred_element_type=jnp.float32) + b_h_ref[l]
        h = h + _gelu_exact(z)

    # out_layer
    out = jnp.dot(h, w_out_ref[...], preferred_element_type=jnp.float32) + b_out_ref[...]
    o_ref[...] = out.astype(o_ref.dtype)


def residual_mlp_forward(x, params, *, tile_m=None):
    """x: [B, in_features] float32. params: dict of pre-transposed weights."""
    B, in_features = x.shape
    w_in = params["w_in"]        # [in_features, H]
    b_in = params["b_in"]        # [1, H]
    w_h = params["w_h"]          # [L, H, H]
    b_h = params["b_h"]          # [L, 1, H]
    w_out = params["w_out"]      # [H, out_features]
    b_out = params["b_out"]      # [1, out_features]
    H = w_in.shape[1]
    L = w_h.shape[0]
    out_features = w_out.shape[1]

    # ---- lane-dense zero padding (numerically exact) -----------------------
    in_pad = _round_up(in_features, _LANE)
    out_pad = _round_up(out_features, _LANE)
    h_pad = _round_up(H, _LANE)

    if in_pad != in_features:
        x = jnp.pad(x, ((0, 0), (0, in_pad - in_features)))
        w_in = jnp.pad(w_in, ((0, in_pad - in_features), (0, 0)))
    if h_pad != H:
        dh = h_pad - H
        w_in = jnp.pad(w_in, ((0, 0), (0, dh)))
        b_in = jnp.pad(b_in, ((0, 0), (0, dh)))
        w_h = jnp.pad(w_h, ((0, 0), (0, dh), (0, dh)))
        b_h = jnp.pad(b_h, ((0, 0), (0, 0), (0, dh)))
        w_out = jnp.pad(w_out, ((0, dh), (0, 0)))
    if out_pad != out_features:
        do = out_pad - out_features
        w_out = jnp.pad(w_out, ((0, 0), (0, do)))
        b_out = jnp.pad(b_out, ((0, 0), (0, do)))

    # ---- row tile: feed the MXU, keep >=2 parallel grid steps (megacore) ---
    if tile_m is None:
        if B >= 512:
            tile_m = 256
        else:
            tile_m = max(_SUBLANE, _round_up(pl.cdiv(B, 2), _SUBLANE))
    B_pad = _round_up(B, tile_m)
    if B_pad != B:
        x = jnp.pad(x, ((0, B_pad - B), (0, 0)))

    grid = (B_pad // tile_m,)
    kernel = functools.partial(_residual_mlp_kernel, num_hidden_layers=L)

    # VMEM budget: double-buffered x/out tiles + resident (constant) weights.
    tile_bytes = 4 * tile_m * (in_pad + out_pad)
    weight_bytes = 4 * (in_pad * h_pad + L * h_pad * h_pad + h_pad * out_pad
                        + (L + 2) * h_pad)
    vmem_limit = int(min(max(4 * tile_bytes + 2 * weight_bytes,
                             16 * 1024 * 1024),
                         64 * 1024 * 1024))

    out_padded = pl.pallas_call(
        kernel,
        out_shape=jax.ShapeDtypeStruct((B_pad, out_pad), x.dtype),
        grid_spec=pltpu.PrefetchScalarGridSpec(
            num_scalar_prefetch=0,
            grid=grid,
            in_specs=[
                pl.BlockSpec((tile_m, in_pad), lambda i: (i, 0)),       # x tile
                pl.BlockSpec((in_pad, h_pad), lambda i: (0, 0)),        # w_in
                pl.BlockSpec((1, h_pad), lambda i: (0, 0)),             # b_in
                pl.BlockSpec((L, h_pad, h_pad), lambda i: (0, 0, 0)),   # w_h stack
                pl.BlockSpec((L, 1, h_pad), lambda i: (0, 0, 0)),       # b_h stack
                pl.BlockSpec((h_pad, out_pad), lambda i: (0, 0)),       # w_out
                pl.BlockSpec((1, out_pad), lambda i: (0, 0)),           # b_out
            ],
            out_specs=pl.BlockSpec((tile_m, out_pad), lambda i: (i, 0)),
        ),
        compiler_params=pltpu.CompilerParams(
            dimension_semantics=("parallel",),
            vmem_limit_bytes=vmem_limit),
    )(x, w_in, b_in, w_h, b_h, w_out, b_out)

    # sliced writeback: drop padded rows / lanes
    return out_padded[:B, :out_features]


def init_params(key, in_features, out_features, hidden_size, hidden_layers):
    """Deterministic init. Weights returned pre-transposed to [in, out]."""
    ks = jax.random.split(key, 2 * (hidden_layers + 2))
    it = iter(ks)

    def linear(kw, kb, fan_in, fan_out):
        # Mimic PyTorch nn.Linear default init (uniform +/- 1/sqrt(fan_in)).
        bound = 1.0 / jnp.sqrt(fan_in)
        w = jax.random.uniform(kw, (fan_in, fan_out), jnp.float32, -bound, bound)
        b = jax.random.uniform(kb, (fan_out,), jnp.float32, -bound, bound)
        return w, b

    w_in, b_in = linear(next(it), next(it), in_features, hidden_size)
    w_hs, b_hs = [], []
    for _ in range(hidden_layers):
        w, b = linear(next(it), next(it), hidden_size, hidden_size)
        w_hs.append(w)
        b_hs.append(b)
    w_out, b_out = linear(next(it), next(it), hidden_size, out_features)

    return {
        "w_in": w_in,
        "b_in": b_in.reshape(1, hidden_size),
        "w_h": jnp.stack(w_hs, axis=0),
        "b_h": jnp.stack(b_hs, axis=0).reshape(hidden_layers, 1, hidden_size),
        "w_out": w_out,
        "b_out": b_out.reshape(1, out_features),
    }


def reference_forward(x, params):
    """Pure-JAX reference matching the PyTorch module semantics."""
    gelu = lambda v: jax.nn.gelu(v, approximate=False)
    h = gelu(x @ params["w_in"] + params["b_in"])
    for l in range(params["w_h"].shape[0]):
        h = h + gelu(h @ params["w_h"][l] + params["b_h"][l])
    return h @ params["w_out"] + params["b_out"]


if __name__ == "__main__":
    in_features = 32
    out_features = 16
    hidden_size = 128
    hidden_layers = 3
    batch = 64   # not a power-of-two requirement; wrapper pads if needed

    key = jax.random.PRNGKey(0)
    k_x, k_p = jax.random.split(key)
    x = jax.random.normal(k_x, (batch, in_features), jnp.float32)
    params = init_params(k_p, in_features, out_features, hidden_size, hidden_layers)

    out = residual_mlp_forward(x, params)
    out = jax.block_until_ready(out)

    ref = reference_forward(x, params)
    assert out.shape == (batch, out_features)
    assert jnp.allclose(out, ref, atol=1e-4, rtol=1e-4)

    print("KERNEL_OK")
</pallas_src>

<mosaic_0001>
module attributes {stable_mosaic.version = 11 : i64} {
  func.func @_residual_mlp_kernel(%arg0: i32, %arg1: memref<32x128xf32, #tpu.memory_space<vmem>>, %arg2: memref<128x128xf32, #tpu.memory_space<vmem>>, %arg3: memref<1x128xf32, #tpu.memory_space<vmem>>, %arg4: memref<3x128x128xf32, #tpu.memory_space<vmem>>, %arg5: memref<3x1x128xf32, #tpu.memory_space<vmem>>, %arg6: memref<128x128xf32, #tpu.memory_space<vmem>>, %arg7: memref<1x128xf32, #tpu.memory_space<vmem>>, %arg8: memref<32x128xf32, #tpu.memory_space<vmem>>) attributes {dimension_semantics = [#tpu.dimension_semantics<parallel>], iteration_bounds = array<i64: 2>, scalar_prefetch = 0 : i64, scratch_operands = 0 : i64, tpu.core_type = #tpu.core_type<tc>, window_params = [{transform_indices = @transform_0, window_bounds = array<i64: 32, 128>}, {pipeline_mode = #tpu.pipeline_mode<synchronous>, transform_indices = @transform_1, window_bounds = array<i64: 128, 128>}, {pipeline_mode = #tpu.pipeline_mode<synchronous>, transform_indices = @transform_2, window_bounds = array<i64: 1, 128>}, {pipeline_mode = #tpu.pipeline_mode<synchronous>, transform_indices = @transform_3, window_bounds = array<i64: 3, 128, 128>}, {pipeline_mode = #tpu.pipeline_mode<synchronous>, transform_indices = @transform_4, window_bounds = array<i64: 3, 1, 128>}, {pipeline_mode = #tpu.pipeline_mode<synchronous>, transform_indices = @transform_5, window_bounds = array<i64: 128, 128>}, {pipeline_mode = #tpu.pipeline_mode<synchronous>, transform_indices = @transform_6, window_bounds = array<i64: 1, 128>}, {transform_indices = @transform_7, window_bounds = array<i64: 32, 128>}]} {
    %c0 = arith.constant 0 : index
    %c0_0 = arith.constant 0 : index
    %0 = vector.load %arg1[%c0, %c0_0] : memref<32x128xf32, #tpu.memory_space<vmem>>, vector<32x128xf32>
    %c0_1 = arith.constant 0 : index
    %c0_2 = arith.constant 0 : index
    %1 = vector.load %arg2[%c0_1, %c0_2] : memref<128x128xf32, #tpu.memory_space<vmem>>, vector<128x128xf32>
    %cst = arith.constant dense<0.000000e+00> : vector<32x128xf32>
    %2 = tpu.matmul %0, %1, %cst {dimension_numbers = #tpu.dot_dimension_numbers<[1], [0], [0], [1], [0, 0, 1, 1], [], []>} : vector<32x128xf32>, vector<128x128xf32>, vector<32x128xf32> -> vector<32x128xf32>
    %c0_3 = arith.constant 0 : index
    %c0_4 = arith.constant 0 : index
    %3 = vector.load %arg3[%c0_3, %c0_4] : memref<1x128xf32, #tpu.memory_space<vmem>>, vector<1x128xf32>
    %4 = vector.broadcast %3 : vector<1x128xf32> to vector<32x128xf32>
    %5 = arith.addf %2, %4 : vector<32x128xf32>
    %cst_5 = arith.constant 5.000000e-01 : f32
    %6 = vector.broadcast %cst_5 : f32 to vector<32x128xf32>
    %7 = arith.mulf %6, %5 : vector<32x128xf32>
    %cst_6 = arith.constant 2.000000e+00 : f32
    %8 = math.sqrt %cst_6 : f32
    %cst_7 = arith.constant 1.000000e+00 : f32
    %9 = arith.divf %cst_7, %8 : f32
    %10 = vector.broadcast %9 : f32 to vector<32x128xf32>
    %11 = arith.mulf %5, %10 : vector<32x128xf32>
    %12 = math.erf %11 : vector<32x128xf32>
    %cst_8 = arith.constant 1.000000e+00 : f32
    %13 = vector.broadcast %cst_8 : f32 to vector<32x128xf32>
    %14 = arith.addf %13, %12 : vector<32x128xf32>
    %15 = arith.mulf %7, %14 : vector<32x128xf32>
    %c0_9 = arith.constant 0 : index
    %c0_10 = arith.constant 0 : index
    %c0_11 = arith.constant 0 : index
    %16 = vector.load %arg4[%c0_9, %c0_10, %c0_11] : memref<3x128x128xf32, #tpu.memory_space<vmem>>, vector<1x128x128xf32>
    %17 = vector.shape_cast %16 : vector<1x128x128xf32> to vector<128x128xf32>
    %cst_12 = arith.constant dense<0.000000e+00> : vector<32x128xf32>
    %18 = tpu.matmul %15, %17, %cst_12 {dimension_numbers = #tpu.dot_dimension_numbers<[1], [0], [0], [1], [0, 0, 1, 1], [], []>} : vector<32x128xf32>, vector<128x128xf32>, vector<32x128xf32> -> vector<32x128xf32>
    %c0_13 = arith.constant 0 : index
    %c0_14 = arith.constant 0 : index
    %c0_15 = arith.constant 0 : index
    %19 = vector.load %arg5[%c0_13, %c0_14, %c0_15] : memref<3x1x128xf32, #tpu.memory_space<vmem>>, vector<1x1x128xf32>
    %20 = vector.shape_cast %19 : vector<1x1x128xf32> to vector<1x128xf32>
    %21 = vector.broadcast %20 : vector<1x128xf32> to vector<32x128xf32>
    %22 = arith.addf %18, %21 : vector<32x128xf32>
    %cst_16 = arith.constant 5.000000e-01 : f32
    %23 = vector.broadcast %cst_16 : f32 to vector<32x128xf32>
    %24 = arith.mulf %23, %22 : vector<32x128xf32>
    %cst_17 = arith.constant 2.000000e+00 : f32
    %25 = math.sqrt %cst_17 : f32
    %cst_18 = arith.constant 1.000000e+00 : f32
    %26 = arith.divf %cst_18, %25 : f32
    %27 = vector.broadcast %26 : f32 to vector<32x128xf32>
    %28 = arith.mulf %22, %27 : vector<32x128xf32>
    %29 = math.erf %28 : vector<32x128xf32>
    %cst_19 = arith.constant 1.000000e+00 : f32
    %30 = vector.broadcast %cst_19 : f32 to vector<32x128xf32>
    %31 = arith.addf %30, %29 : vector<32x128xf32>
    %32 = arith.mulf %24, %31 : vector<32x128xf32>
    %33 = arith.addf %15, %32 : vector<32x128xf32>
    %c1 = arith.constant 1 : index
    %c0_20 = arith.constant 0 : index
    %c0_21 = arith.constant 0 : index
    %34 = vector.load %arg4[%c1, %c0_20, %c0_21] : memref<3x128x128xf32, #tpu.memory_space<vmem>>, vector<1x128x128xf32>
    %35 = vector.shape_cast %34 : vector<1x128x128xf32> to vector<128x128xf32>
    %cst_22 = arith.constant dense<0.000000e+00> : vector<32x128xf32>
    %36 = tpu.matmul %33, %35, %cst_22 {dimension_numbers = #tpu.dot_dimension_numbers<[1], [0], [0], [1], [0, 0, 1, 1], [], []>} : vector<32x128xf32>, vector<128x128xf32>, vector<32x128xf32> -> vector<32x128xf32>
    %c1_23 = arith.constant 1 : index
    %c0_24 = arith.constant 0 : index
    %c0_25 = arith.constant 0 : index
    %37 = vector.load %arg5[%c1_23, %c0_24, %c0_25] : memref<3x1x128xf32, #tpu.memory_space<vmem>>, vector<1x1x128xf32>
    %38 = vector.shape_cast %37 : vector<1x1x128xf32> to vector<1x128xf32>
    %39 = vector.broadcast %38 : vector<1x128xf32> to vector<32x128xf32>
    %40 = arith.addf %36, %39 : vector<32x128xf32>
    %cst_26 = arith.constant 5.000000e-01 : f32
    %41 = vector.broadcast %cst_26 : f32 to vector<32x128xf32>
    %42 = arith.mulf %41, %40 : vector<32x128xf32>
    %cst_27 = arith.constant 2.000000e+00 : f32
    %43 = math.sqrt %cst_27 : f32
    %cst_28 = arith.constant 1.000000e+00 : f32
    %44 = arith.divf %cst_28, %43 : f32
    %45 = vector.broadcast %44 : f32 to vector<32x128xf32>
    %46 = arith.mulf %40, %45 : vector<32x128xf32>
    %47 = math.erf %46 : vector<32x128xf32>
    %cst_29 = arith.constant 1.000000e+00 : f32
    %48 = vector.broadcast %cst_29 : f32 to vector<32x128xf32>
    %49 = arith.addf %48, %47 : vector<32x128xf32>
    %50 = arith.mulf %42, %49 : vector<32x128xf32>
    %51 = arith.addf %33, %50 : vector<32x128xf32>
    %c2 = arith.constant 2 : index
    %c0_30 = arith.constant 0 : index
    %c0_31 = arith.constant 0 : index
    %52 = vector.load %arg4[%c2, %c0_30, %c0_31] : memref<3x128x128xf32, #tpu.memory_space<vmem>>, vector<1x128x128xf32>
    %53 = vector.shape_cast %52 : vector<1x128x128xf32> to vector<128x128xf32>
    %cst_32 = arith.constant dense<0.000000e+00> : vector<32x128xf32>
    %54 = tpu.matmul %51, %53, %cst_32 {dimension_numbers = #tpu.dot_dimension_numbers<[1], [0], [0], [1], [0, 0, 1, 1], [], []>} : vector<32x128xf32>, vector<128x128xf32>, vector<32x128xf32> -> vector<32x128xf32>
    %c2_33 = arith.constant 2 : index
    %c0_34 = arith.constant 0 : index
    %c0_35 = arith.constant 0 : index
    %55 = vector.load %arg5[%c2_33, %c0_34, %c0_35] : memref<3x1x128xf32, #tpu.memory_space<vmem>>, vector<1x1x128xf32>
    %56 = vector.shape_cast %55 : vector<1x1x128xf32> to vector<1x128xf32>
    %57 = vector.broadcast %56 : vector<1x128xf32> to vector<32x128xf32>
    %58 = arith.addf %54, %57 : vector<32x128xf32>
    %cst_36 = arith.constant 5.000000e-01 : f32
    %59 = vector.broadcast %cst_36 : f32 to vector<32x128xf32>
    %60 = arith.mulf %59, %58 : vector<32x128xf32>
    %cst_37 = arith.constant 2.000000e+00 : f32
    %61 = math.sqrt %cst_37 : f32
    %cst_38 = arith.constant 1.000000e+00 : f32
    %62 = arith.divf %cst_38, %61 : f32
    %63 = vector.broadcast %62 : f32 to vector<32x128xf32>
    %64 = arith.mulf %58, %63 : vector<32x128xf32>
    %65 = math.erf %64 : vector<32x128xf32>
    %cst_39 = arith.constant 1.000000e+00 : f32
    %66 = vector.broadcast %cst_39 : f32 to vector<32x128xf32>
    %67 = arith.addf %66, %65 : vector<32x128xf32>
    %68 = arith.mulf %60, %67 : vector<32x128xf32>
    %69 = arith.addf %51, %68 : vector<32x128xf32>
    %c0_40 = arith.constant 0 : index
    %c0_41 = arith.constant 0 : index
    %70 = vector.load %arg6[%c0_40, %c0_41] : memref<128x128xf32, #tpu.memory_space<vmem>>, vector<128x128xf32>
    %cst_42 = arith.constant dense<0.000000e+00> : vector<32x128xf32>
    %71 = tpu.matmul %69, %70, %cst_42 {dimension_numbers = #tpu.dot_dimension_numbers<[1], [0], [0], [1], [0, 0, 1, 1], [], []>} : vector<32x128xf32>, vector<128x128xf32>, vector<32x128xf32> -> vector<32x128xf32>
    %c0_43 = arith.constant 0 : index
    %c0_44 = arith.constant 0 : index
    %72 = vector.load %arg7[%c0_43, %c0_44] : memref<1x128xf32, #tpu.memory_space<vmem>>, vector<1x128xf32>
    %73 = vector.broadcast %72 : vector<1x128xf32> to vector<32x128xf32>
    %74 = arith.addf %71, %73 : vector<32x128xf32>
    %c0_45 = arith.constant 0 : index
    %c0_46 = arith.constant 0 : index
    %75 = vector.load %arg8[%c0_45, %c0_46] : memref<32x128xf32, #tpu.memory_space<vmem>>, vector<32x128xf32>
    tpu.vector_store %arg8[%c0_45, %c0_46], %74 {strides = array<i32>} : memref<32x128xf32, #tpu.memory_space<vmem>>, vector<32x128xf32>,
    return
  }
  func.func @transform_0(%arg0: i32) -> (i32, i32) {
    %c0_i32 = arith.constant 0 : i32
    %c0_i32_0 = arith.constant 0 : i32
    return %arg0, %c0_i32 : i32, i32
  }
  func.func @transform_1(%arg0: i32) -> (i32, i32) {
    %c0_i32 = arith.constant 0 : i32
    %c0_i32_0 = arith.constant 0 : i32
    %c0_i32_1 = arith.constant 0 : i32
    return %c0_i32, %c0_i32_0 : i32, i32
  }
  func.func @transform_2(%arg0: i32) -> (i32, i32) {
    %c0_i32 = arith.constant 0 : i32
    %c0_i32_0 = arith.constant 0 : i32
    %c0_i32_1 = arith.constant 0 : i32
    return %c0_i32, %c0_i32_0 : i32, i32
  }
  func.func @transform_3(%arg0: i32) -> (i32, i32, i32) {
    %c0_i32 = arith.constant 0 : i32
    %c0_i32_0 = arith.constant 0 : i32
    %c0_i32_1 = arith.constant 0 : i32
    %c0_i32_2 = arith.constant 0 : i32
    return %c0_i32, %c0_i32_0, %c0_i32_1 : i32, i32, i32
  }
  func.func @transform_4(%arg0: i32) -> (i32, i32, i32) {
    %c0_i32 = arith.constant 0 : i32
    %c0_i32_0 = arith.constant 0 : i32
    %c0_i32_1 = arith.constant 0 : i32
    %c0_i32_2 = arith.constant 0 : i32
    return %c0_i32, %c0_i32_0, %c0_i32_1 : i32, i32, i32
  }
  func.func @transform_5(%arg0: i32) -> (i32, i32) {
    %c0_i32 = arith.constant 0 : i32
    %c0_i32_0 = arith.constant 0 : i32
    %c0_i32_1 = arith.constant 0 : i32
    return %c0_i32, %c0_i32_0 : i32, i32
  }
  func.func @transform_6(%arg0: i32) -> (i32, i32) {
    %c0_i32 = arith.constant 0 : i32
    %c0_i32_0 = arith.constant 0 : i32
    %c0_i32_1 = arith.constant 0 : i32
    return %c0_i32, %c0_i32_0 : i32, i32
  }
  func.func @transform_7(%arg0: i32) -> (i32, i32) {
    %c0_i32 = arith.constant 0 : i32
    %c0_i32_0 = arith.constant 0 : i32
    return %arg0, %c0_i32 : i32, i32
  }
}

</mosaic_0001>

<bundles_post_ra>
// kernel: tpu_custom_call.1
= control target key start
LH: loop header
LB: loop body
LE: loop exit
PB: predicated region body
PF: predicated region fallthrough
CT: control target
= control target key end

     0   :  { %12 = vsyncpa [#allocation3], 0  ;;  %s2294_s0 = inlined_call_operand.hbm [shape: f32[64,128], index: 0, kind: input, shape index: {}]   ;;  %s2295_s1 = inlined_call_operand.hbm [shape: f32[128,128], index: 1, kind: input, shape index: {}]   ;;  %s2296_s2 = inlined_call_operand.vmem [shape: f32[1,128], index: 2, kind: input, shape index: {}]   ;;  %s2297_s3 = inlined_call_operand.hbm [shape: f32[3,128,128], index: 3, kind: input, shape index: {}]   ;;  %s2298_s4 = inlined_call_operand.vmem [shape: f32[3,1,128], index: 4, kind: input, shape index: {}]   ;;  %s2299_s5 = inlined_call_operand.hbm [shape: f32[128,128], index: 5, kind: input, shape index: {}]   ;;  %s2300_s6 = inlined_call_operand.vmem [shape: f32[1,128], index: 6, kind: input, shape index: {}]   ;;  %s2301_s7 = inlined_call_operand.hbm [shape: f32[64,128], index: 7, kind: output, shape index: {}]  }
   0x1   :  { %14 = vsyncpa [#allocation3 + $0x1], 0 }
   0x2   :  { %15 = vsyncpa [#allocation6], 0 }
   0x3   :  { %16 = vsyncpa [#allocation9], 0 }
   0x4   :  { %17 = vsyncpa [#allocation4], 0 }
   0x5   :  { %19 = vsyncpa [#allocation4 + $0x1], 0  ;;  %s1950_s24 = smov 0   ;;  %s1952_s25 = smov 0  }
   0x6   :  { %s1954_s26 = smov 0   ;;  %s1956_s27 = smov 0  }
   0x7 LB: > { %s1971_s28 = sadd.s32 4294967295, %s1899_s27   ;;  %s1103_s29 = sadd.s32 4294967294, %s1899_s27   ;;  %s1899_s27 = sphi %s1956_s27, %s2327_s27   ;;  %s1895_s26 = sphi %s1954_s26, %s2326_s26   ;;  %s1891_s25 = sphi %s1952_s25, %s2325_s25   ;;  %s1887_s24 = sphi %s1950_s24, %s2324_s24  }
   0x8   : > { %p45_p0 = scmp.ne.s32.totalorder %s1891_s25, %s1887_s24  ;;  %p2302_p1 = scmp.eq.s32.totalorder %s1971_s28, 0 }
   0x9   : > { %p201_p3 = scmp.eq.s32.totalorder %s1103_s29, 1  ;;  %p1104_p5 = scmp.ge.s32.totalorder %s1899_s27, 1 }
   0xa   : > { %p1980_p4 = por %p2302_p1, %p45_p0  ;;  %p208_p7 = scmp.lt.s32.totalorder %s1899_s27, 3 }
   0xb   : > { %p1985_p6 = por %p201_p3, %p45_p0  ;;  %s1901_s10 = smov [#allocation5]  }
   0xc   : > { %s2306_s30 = scalar_select %p1980_p4, 1, 0 }
   0xd   : > { %s2307_s8 = scalar_select %p1985_p6, 1, 0 }
   0xe   : > { %p1990_p8 = pnand %p1104_p5, %p208_p7  ;;  %s220_s11 = sshll.u32 %s1901_s10, 4  ;;  %s1994_s11 = int_to_ptr.vmem [resolvable:$true] %s220_s11 }
   0xf   : > { %2308 = sst [smem:[#allocation15_spill]] %s2307_s8  ;;  %s1902_s13 = smov [#allocation7]  }
  0x10   : > { %s2309_s9 = scalar_select %p1990_p8, 1, 0 }
  0x11   : > { %p1614_p9 = pneg %p1990_p8  ;;  %s236_s14 = sshll.u32 %s1902_s13, 4  ;;  %s2005_s14 = int_to_ptr.vmem [resolvable:$true] %s236_s14 }
  0x12   : > { %s1903_s15 = smov [#allocation8]   ;;  %s1711_s19 = scalar_lea.hbm %s2295_s1, 2048 }
  0x13   : > { %p2001_p11 = pnand %p1614_p9, %p2302_p1  ;;  %s2007_s16 = sshll.u32 %s1903_s15, 4  ;;  %s253_s16 = int_to_ptr.vmem [resolvable:$true] %s2007_s16 }
  0x14   : > { %p1712_p12 = scmp.ne.s32.totalorder %s2295_s1, %s1711_s19  ;;  %p1718_p5 = scmp.lt.u32.totalorder %s1711_s19, %s2295_s1 }
  0x15   : > { %p2017_p13 = pneg %p2001_p11 }
  0x17   : > { %p1714_p0 = pnand %p2017_p13, %p1712_p12 }
  0x19   : > { %p1715_p3 = pneg %p1714_p0 }
  0x1b   : > { %p1720_p7 = pnand %p1718_p5, %p1715_p3 }
  0x1d   : > { %1723 = shalt.err (!%p1720_p7)
}
  0x1e   : > { %s1724_s10 = scalar_lea.vmem %s1994_s11, 2048  ;;  %p1732_p2 = scmp.lt.s32.totalorder %s1994_s11, %s1994_s11 }
  0x1f   : > { %p1725_p9 = scmp.ne.s32.totalorder %s1994_s11, %s1724_s10  ;;  %p1733_p6 = scmp.lt.s32.totalorder %s1724_s10, %s1724_s10 }
  0x21   : > { %p1727_p10 = pnand %p1725_p9, %p2017_p13  ;;  %p1734_p12 = por %p1733_p6, %p1732_p2 }
  0x23   : > { %p1728_p1 = pneg %p1727_p10 }
  0x25   : > { %p1735_p0 = pnand %p1734_p12, %p1728_p1 }
  0x27   : > { %1738 = shalt.err (!%p1735_p0)
}
  0x28   : > { %s1904_s13 = smov 128   ;;  %s1905_s15 = smov 8  }
  0x29   : > { %1617 = dma.hbm_to_vmem [thread:$0]  (!%p2001_p11), %s2295_s1, 2048, %s1994_s11, [#allocation6], %s1904_s13, %s1904_s13, %s1905_s15  }
  0x2a   : > { %s1739_s21 = scalar_lea.hbm %s2297_s3, 6144 }
  0x2b   : > { %p1740_p1 = scmp.ne.s32.totalorder %s2297_s3, %s1739_s21  ;;  %p1746_p10 = scmp.lt.u32.totalorder %s1739_s21, %s2297_s3 }
  0x2d   : > { %p1742_p2 = pnand %p1740_p1, %p2017_p13 }
  0x2f   : > { %p1743_p6 = pneg %p1742_p2 }
  0x31   : > { %p1748_p3 = pnand %p1746_p10, %p1743_p6 }
  0x33   : > { %1751 = shalt.err (!%p1748_p3)
}
  0x34   : > { %s1752_s11 = scalar_lea.vmem %s2005_s14, 6144  ;;  %p1760_p12 = scmp.lt.s32.totalorder %s2005_s14, %s2005_s14 }
  0x35   : > { %p1753_p5 = scmp.ne.s32.totalorder %s2005_s14, %s1752_s11  ;;  %p1761_p0 = scmp.lt.s32.totalorder %s1752_s11, %s1752_s11 }
  0x37   : > { %p1755_p7 = pnand %p1753_p5, %p2017_p13  ;;  %p1762_p1 = por %p1761_p0, %p1760_p12 }
  0x39   : > { %p1756_p9 = pneg %p1755_p7 }
  0x3b   : > { %p1763_p2 = pnand %p1762_p1, %p1756_p9 }
  0x3d   : > { %1766 = shalt.err (!%p1763_p2)
}
  0x3e   : > { %1620 = dma.hbm_to_vmem [thread:$0]  (!%p2001_p11), %s2297_s3, 6144, %s2005_s14, [#allocation6], %s1904_s13, %s1904_s13, %s1905_s15  }
  0x3f   : > { %s1767_s20 = scalar_lea.hbm %s2299_s5, 2048 }
  0x40   : > { %p1768_p6 = scmp.ne.s32.totalorder %s2299_s5, %s1767_s20  ;;  %p1774_p5 = scmp.lt.u32.totalorder %s1767_s20, %s2299_s5 }
  0x42   : > { %p1770_p10 = pnand %p1768_p6, %p2017_p13 }
  0x44   : > { %p1771_p3 = pneg %p1770_p10 }
  0x46   : > { %p1776_p7 = pnand %p1774_p5, %p1771_p3 }
  0x48   : > { %1779 = shalt.err (!%p1776_p7)
}
  0x49   : > { %s1780_s11 = scalar_lea.vmem %s253_s16, 2048  ;;  %p1788_p1 = scmp.lt.s32.totalorder %s253_s16, %s253_s16 }
  0x4a   : > { %p1781_p9 = scmp.ne.s32.totalorder %s253_s16, %s1780_s11  ;;  %p1789_p2 = scmp.lt.s32.totalorder %s1780_s11, %s1780_s11 }
  0x4c   : > { %p1783_p12 = pnand %p1781_p9, %p2017_p13  ;;  %p1790_p4 = por %p1789_p2, %p1788_p1 }
  0x4e   : > { %p1784_p0 = pneg %p1783_p12 }
  0x50   : > { %p1791_p8 = pnand %p1790_p4, %p1784_p0 }
  0x52   : > { %1794 = shalt.err (!%p1791_p8)
}
  0x53   : > { %1623 = dma.hbm_to_vmem [thread:$0]  (!%p2001_p11), %s2299_s5, 2048, %s253_s16, [#allocation9], %s1904_s13, %s1904_s13, %s1905_s15  }
  0x54   : > { %s2090_s22 = sadd.s32 1, %s1899_s27   ;;  %s32_s17 = sadd.s32 1, %s1895_s26 }
  0x55   : > { %s29_s12 = ssub.s32 %s1899_s27, %s2090_s22  ;;  %p39_p8 = scmp.ne.s32.totalorder %s1895_s26, %s1891_s25 }
  0x56   : > { %p30_p4 = scmp.eq.s32.totalorder %s29_s12, 0  ;;  %p40_p13 = scmp.eq.s32.totalorder %s1899_s27, 0 }
  0x57   : > { %p1635_p6 = scmp.lt.s32.totalorder %s1899_s27, 2  ;;  %p2312_p3 = scmp.eq.s32.totalorder %s1971_s28, 1 }
  0x58   : > { %s2100_s18 = scalar_select %p30_p4, %s1895_s26, %s32_s17  }
  0x59   : > { %p41_p10 = por %p40_p13, %p39_p8  ;;  %p2104_p5 = por %p2312_p3, %p39_p8 }
  0x5a   : > { %s269_s20 = sand.u32 1, %s1895_s26   ;;  %s1130_s21 = sshll.u32 %s1899_s27, 9 }
  0x5b   : > { %s1109_s16 = sshll.u32 %s269_s20, 5  ;;  %s2113_s10 = scalar_lea.hbm %s2294_s0, %s1130_s21 }
  0x5c   : > { %s273_s11 = scalar_lea.vmem [#allocation2], %s1109_s16  ;;  %p2115_p11 = pnand %p1635_p6, %p41_p10 }
  0x5d   : > { %s280_s14 = sshll.u32 %s273_s11, 4  ;;  %s2121_s12 = scalar_lea.sflag [#allocation3], %s269_s20  ;;  %s2119_s14 = int_to_ptr.vmem [resolvable:$true] %s280_s14 }
  0x5e   : > { %s1795_s17 = scalar_lea.hbm %s2113_s10, 512  ;;  %p1797_p9 = pneg %p2115_p11 }
  0x5f   : > { %p1796_p7 = scmp.ne.s32.totalorder %s2113_s10, %s1795_s17  ;;  %s1800_s23 = scalar_lea.hbm %s2294_s0, 1024 }
  0x60   : > { %p1801_p1 = scmp.lt.u32.totalorder %s2113_s10, %s2294_s0  ;;  %p1802_p2 = scmp.lt.u32.totalorder %s1800_s23, %s1795_s17 }
  0x61   : > { %p1798_p12 = pnand %p1797_p9, %p1796_p7  ;;  %p1804_p8 = scmp.lt.u32.totalorder %s1795_s17, %s2113_s10 }
  0x62   : > { %p1803_p4 = por %p1802_p2, %p1801_p1 }
  0x63   : > { %p1799_p0 = pneg %p1798_p12 }
  0x64   : > { %p1805_p13 = por %p1804_p8, %p1803_p4 }
  0x66   : > { %p1806_p6 = pnand %p1805_p13, %p1799_p0 }
  0x68   : > { %1809 = shalt.err (!%p1806_p6)
}
  0x69   : > { %s1810_s20 = scalar_lea.vmem %s2119_s14, 512  ;;  %s1906_s21 = smov [#allocation2]  }
  0x6a   : > { %p1811_p10 = scmp.ne.s32.totalorder %s2119_s14, %s1810_s20  ;;  %s1815_s16 = sshll.u32 %s1906_s21, 4  ;;  %s1816_s16 = int_to_ptr.vmem [resolvable:$false] %s1815_s16 }
  0x6b   : > { %s1817_s29 = scalar_lea.vmem %s1816_s16, 1024  ;;  %p1818_p12 = scmp.lt.s32.totalorder %s2119_s14, %s1816_s16 }
  0x6c   : > { %p1813_p3 = pnand %p1811_p10, %p1797_p9  ;;  %p1819_p1 = scmp.lt.s32.totalorder %s1817_s29, %s1810_s20 }
  0x6e   : > { %p1814_p7 = pneg %p1813_p3  ;;  %p1820_p2 = por %p1819_p1, %p1818_p12 }
  0x70   : > { %p1821_p4 = pnand %p1820_p2, %p1814_p7 }
  0x72   : > { %1824 = shalt.err (!%p1821_p4)
}
  0x73   : > { %1627 = dma.hbm_to_vmem [thread:$0]  (!%p2115_p11), %s2113_s10, 512, %s2119_s14, %s2121_s12, %s1904_s13, %s1904_s13, %s1905_s15  }
  0x74   : > { %p2315_p9 = scmp.ne.s32.totalorder %s2309_s9, 0 }
  0x75   : > { %s2155_s17 = sand.u32 (!%p2315_p9), 1, %s1891_s25   ;;  %p2316_p0 = scmp.ne.s32.totalorder (!%p2315_p9), %s2306_s30, 0 }
  0x76   : > { %292 = sbr.rel (%p2315_p9) target bundleno = 1340 (0x53c), region = 48  ;;  %s1113_s23 = sshll.u32 (!%p2315_p9), %s2155_s17, 5 }
  0x77   : > { %s295_s11 = scalar_lea.sflag (!%p2315_p9), [#allocation3], %s2155_s17  ;;  %s2161_s8 = scalar_lea.vmem (!%p2315_p9), [#allocation2], %s1113_s23 }
  0x7d   : > { %1870 = dma.done.wait (%p2316_p0), %s295_s11, 512  }
  0x7e   : > { %1872 = vsyncadd (%p2316_p0), %s295_s11, 4294966784  ;;  %p2317_p11 = scmp.eq.s32.totalorder %s1971_s28, 0 }
  0x80   : > { %1874 = dma.done.wait (%p2317_p11), [#allocation6], 8192   ;;  %p2318_p8 = pmov %p2317_p11 }
  0x82   : > { %1876 = vsyncadd (%p2318_p8), [#allocation6], 4294959104  ;;  %p2319_p13 = pmov %p2318_p8 }
  0x83   : > { %p2320_p6 = pmov %p2318_p8 }
  0x84   : > { %1878 = dma.done.wait (%p2319_p13), [#allocation9], 2048  }
  0x85   : > { %1880 = vsyncadd (%p2320_p6), [#allocation9], 4294965248  ;;  %v347_v0 = vld [vmem:[#allocation5] sm:$0xff]  ;;  %v348_v1 = vld [vmem:[#allocation5 + $0x8] sm:$0xff]  ;;  %s340_s29 = scalar_lea.vmem [#allocation10], %s1113_s23  ;;  %s988_s23 = scalar_lea.sflag [#allocation4], %s2155_s17 }
  0x86   : > { %v349_v2 = vld [vmem:[#allocation5 + $0x10] sm:$0xff]  ;;  %v1422_v3 = vpack.c.bf16 %v348_v1, %v347_v0  ;;  %v350_v4 = vld [vmem:[#allocation5 + $0x18] sm:$0xff]  ;;  %v351_v6 = vld [vmem:[#allocation5 + $0x20] sm:$0xff]  ;;  %s1001_s11 = sshll.u32 %s340_s29, 4  ;;  %s1907_s15 = smov [#allocation10]   ;;  %s2245_s11 = int_to_ptr.vmem [resolvable:$true] %s1001_s11 }
  0x87   : > { %v1426_v5 = vpack.c.bf16 %v350_v4, %v349_v2  ;;  %v352_v7 = vld [vmem:[#allocation5 + $0x28] sm:$0xff]  ;;  %v343_v9 = vld [vmem:[%s2161_s8] sm:$0xff]  ;;  %v353_v10 = vld [vmem:[#allocation5 + $0x30] sm:$0xff]  ;;  %s1829_s10 = sshll.u32 %s1907_s15, 4  ;;  %s1830_s10 = int_to_ptr.vmem [resolvable:$false] %s1829_s10 }
  0x88   : > { %1423 = vmatprep.subr.bf16.mxu0 %v1422_v3  ;;  %v1430_v8 = vpack.c.bf16 %v352_v7, %v351_v6  ;;  %v354_v11 = vld [vmem:[#allocation5 + $0x38] sm:$0xff]  ;;  %1264 = vmatprep.mubr.f32.mxu0 %v343_v9  ;;  %v475_v12 = vld [vmem:[#allocation7] sm:$0xff]  ;;  %v476_v13 = vld [vmem:[#allocation7 + $0x8] sm:$0xff]  ;;  %s1831_s14 = scalar_lea.vmem %s1830_s10, 1024  ;;  %p1832_p12 = scmp.lt.s32.totalorder %s2245_s11, %s1830_s10 }
  0x89   : > { %1425 = vmatpush3.bf16.msra.mxu0 %v1422_v3  ;;  %v477_v14 = vld [vmem:[#allocation7 + $0x10] sm:$0xff]  ;;  %v478_v15 = vld [vmem:[#allocation7 + $0x18] sm:$0xff]  ;;  %v1454_v16 = vpack.c.bf16 %v476_v13, %v475_v12  ;;  %v1434_v18 = vpack.c.bf16 %v354_v11, %v353_v10  ;;  %v479_v19 = vld [vmem:[#allocation7 + $0x20] sm:$0xff] }
  0x8a   : > { %1427 = vmatprep.subr.bf16.mxu0 %v1426_v5  ;;  %v1458_v17 = vpack.c.bf16 %v478_v15, %v477_v14  ;;  %v480_v20 = vld [vmem:[#allocation7 + $0x28] sm:$0xff]  ;;  %v355_v21 = vld [vmem:[#allocation5 + $0x40] sm:$0xff]  ;;  %v357_v25 = vld [vmem:[#allocation5 + $0x50] sm:$0xff] }
  0x8b   : > { %v356_v22 = vld [vmem:[#allocation5 + $0x48] sm:$0xff]  ;;  %1455 = vmatprep.subr.bf16.mxu1 %v1454_v16  ;;  %v1462_v23 = vpack.c.bf16 %v480_v20, %v479_v19  ;;  %v358_v26 = vld [vmem:[#allocation5 + $0x58] sm:$0xff]  ;;  %v359_v28 = vld [vmem:[#allocation5 + $0x60] sm:$0xff] }
  0x8c   : > { %1457 = vmatpush3.bf16.msra.mxu1 %v1454_v16  ;;  %v1438_v24 = vpack.c.bf16 %v356_v22, %v355_v21  ;;  %v1442_v27 = vpack.c.bf16 %v358_v26, %v357_v25  ;;  %v360_v29 = vld [vmem:[#allocation5 + $0x68] sm:$0xff]  ;;  %v361_v31 = vld [vmem:[#allocation5 + $0x70] sm:$0xff]  ;;  %v362_v32 = vld [vmem:[#allocation5 + $0x78] sm:$0xff] }
  0x8d   : > { %1429 = vmatpush3.bf16.msra.mxu0 %v1426_v5  ;;  %1459 = vmatprep.subr.bf16.mxu1 %v1458_v17  ;;  %v1446_v30 = vpack.c.bf16 %v360_v29, %v359_v28  ;;  %v1450_v33 = vpack.c.bf16 %v362_v32, %v361_v31  ;;  %v344_v34 = vld [vmem:[%s2161_s8 + $0x8] sm:$0xff]  ;;  %v345_v35 = vld [vmem:[%s2161_s8 + $0x10] sm:$0xff]  ;;  %v346_v36 = vld [vmem:[%s2161_s8 + $0x18] sm:$0xff]  ;;  %s1131_s8 = sshll.u32 %s1971_s28, 9  ;;  %s1825_s28 = scalar_lea.vmem %s2245_s11, 512 }
  0x8e   : > { %1431 = vmatprep.subr.bf16.mxu0 %v1430_v8  ;;  %v481_v37 = vld [vmem:[#allocation7 + $0x30] sm:$0xff]  ;;  %v482_v38 = vld [vmem:[#allocation7 + $0x38] sm:$0xff]  ;;  %v483_v40 = vld [vmem:[#allocation7 + $0x40] sm:$0xff]  ;;  %s2250_s13 = scalar_lea.hbm %s2301_s7, %s1131_s8  ;;  %p1826_p10 = scmp.ne.s32.totalorder %s2245_s11, %s1825_s28 }
  0x8f   : > { %v1466_v39 = vpack.c.bf16 %v482_v38, %v481_v37  ;;  %v484_v41 = vld [vmem:[#allocation7 + $0x48] sm:$0xff]  ;;  %v485_v43 = vld [vmem:[#allocation7 + $0x50] sm:$0xff]  ;;  %v486_v44 = vld [vmem:[#allocation7 + $0x58] sm:$0xff]  ;;  %p1833_p1 = scmp.lt.s32.totalorder %s1831_s14, %s1825_s28 }
  0x90   : > { %1461 = vmatpush3.bf16.msra.mxu1 %v1458_v17  ;;  %v1470_v42 = vpack.c.bf16 %v484_v41, %v483_v40  ;;  %v1474_v45 = vpack.c.bf16 %v486_v44, %v485_v43  ;;  %v487_v46 = vld [vmem:[#allocation7 + $0x60] sm:$0xff]  ;;  %v488_v47 = vld [vmem:[#allocation7 + $0x68] sm:$0xff]  ;;  %v489_v49 = vld [vmem:[#allocation7 + $0x70] sm:$0xff]  ;;  %p1827_p3 = pnand %p1826_p10, %p2104_p5 }
  0x91   : > { %1433 = vmatpush3.bf16.msra.mxu0 %v1430_v8  ;;  %1463 = vmatprep.subr.bf16.mxu1 %v1462_v23  ;;  %v1478_v48 = vpack.c.bf16 %v488_v47, %v487_v46  ;;  %v490_v50 = vld [vmem:[#allocation7 + $0x78] sm:$0xff]  ;;  %v608_v52 = vld [vmem:[#allocation7 + $0x80] sm:$0xff]  ;;  %v609_v53 = vld [vmem:[#allocation7 + $0x88] sm:$0xff]  ;;  %p1834_p2 = por %p1833_p1, %p1832_p12 }
  0x92   : > { %1435 = vmatprep.subr.bf16.mxu0 %v1434_v18  ;;  %v1482_v51 = vpack.c.bf16 %v490_v50, %v489_v49  ;;  %v610_v54 = vld [vmem:[#allocation7 + $0x90] sm:$0xff]  ;;  %v1486_v55 = vpack.c.bf16 %v609_v53, %v608_v52  ;;  %v611_v56 = vld [vmem:[#allocation7 + $0x98] sm:$0xff]  ;;  %v1118_v58 = vld [vmem:[%s2296_s2] ss:$0 sm:$0xff]  ;;  %p1828_p7 = pneg %p1827_p3 }
  0x93   : > { %v1490_v57 = vpack.c.bf16 %v611_v56, %v610_v54  ;;  %v614_v26 = vld [vmem:[#allocation7 + $0xb0] sm:$0xff]  ;;  %v616_v29 = vld [vmem:[#allocation7 + $0xc0] sm:$0xff] }
  0x94   : > { %1465 = vmatpush3.bf16.msra.mxu1 %v1462_v23  ;;  %v612_v23 = vld [vmem:[#allocation7 + $0xa0] sm:$0xff]  ;;  %v618_v32 = vld [vmem:[#allocation7 + $0xd0] sm:$0xff]  ;;  %p1835_p4 = pnand %p1834_p2, %p1828_p7 }
  0x95   : > { %1437 = vmatpush3.bf16.msra.mxu0 %v1434_v18  ;;  %1467 = vmatprep.subr.bf16.mxu1 %v1466_v39  ;;  %v622_v38 = vld [vmem:[#allocation7 + $0xf0] sm:$0xff]  ;;  %v742_v41 = vld [vmem:[#allocation7 + $0x100] sm:$0xff] }
  0x96   : > { %1439 = vmatprep.subr.bf16.mxu0 %v1438_v24  ;;  %v744_v43 = vld [vmem:[#allocation7 + $0x110] sm:$0xff]  ;;  %v1119_v47 = vld [vmem:[%s2298_s4] ss:$0 sm:$0xff] }
  0x98   : > { %1469 = vmatpush3.bf16.msra.mxu1 %v1466_v39  ;;  %v623_v39 = vld [vmem:[#allocation7 + $0xf8] sm:$0xff] }
  0x99   : > { %1441 = vmatpush3.bf16.msra.mxu0 %v1438_v24  ;;  %1471 = vmatprep.subr.bf16.mxu1 %v1470_v42  ;;  %v613_v24 = vld [vmem:[#allocation7 + $0xa8] sm:$0xff]  ;;  %v1514_v40 = vpack.c.bf16 %v623_v39, %v622_v38  ;;  %v878_v38 = vld [vmem:[#allocation8 + $0x18] sm:$0xff] }
  0x9a   : > { %1443 = vmatprep.subr.bf16.mxu0 %v1442_v27  ;;  %v1494_v25 = vpack.c.bf16 %v613_v24, %v612_v23  ;;  %v750_v24 = vld [vmem:[#allocation7 + $0x140] sm:$0xff] }
  0x9c   : > { %1473 = vmatpush3.bf16.msra.mxu1 %v1470_v42  ;;  %v743_v42 = vld [vmem:[#allocation7 + $0x108] sm:$0xff] }
  0x9d   : > { %1445 = vmatpush3.bf16.msra.mxu0 %v1442_v27  ;;  %1475 = vmatprep.subr.bf16.mxu1 %v1474_v45  ;;  %v615_v27 = vld [vmem:[#allocation7 + $0xb8] sm:$0xff]  ;;  %v1518_v44 = vpack.c.bf16 %v743_v42, %v742_v41 }
  0x9e   : > { %1447 = vmatprep.subr.bf16.mxu0 %v1446_v30  ;;  %v1498_v28 = vpack.c.bf16 %v615_v27, %v614_v26  ;;  %v753_v26 = vld [vmem:[#allocation7 + $0x158] sm:$0xff] }
  0xa0   : > { %1477 = vmatpush3.bf16.msra.mxu1 %v1474_v45  ;;  %v745_v45 = vld [vmem:[#allocation7 + $0x118] sm:$0xff] }
  0xa1   : > { %1449 = vmatpush3.bf16.msra.mxu0 %v1446_v30  ;;  %1479 = vmatprep.subr.bf16.mxu1 %v1478_v48  ;;  %v617_v30 = vld [vmem:[#allocation7 + $0xc8] sm:$0xff]  ;;  %v1522_v46 = vpack.c.bf16 %v745_v45, %v744_v43 }
  0xa2   : > { %1451 = vmatprep.subr.bf16.mxu0 %v1450_v33  ;;  %v1502_v31 = vpack.c.bf16 %v617_v30, %v616_v29  ;;  %v755_v29 = vld [vmem:[#allocation7 + $0x168] sm:$0xff] }
  0xa4   : > { %1481 = vmatpush3.bf16.msra.mxu1 %v1478_v48 }
  0xa5   : > { %1453 = vmatpush3.bf16.msra.mxu0 %v1450_v33  ;;  %1483 = vmatprep.subr.bf16.mxu1 %v1482_v51  ;;  %v619_v33 = vld [vmem:[#allocation7 + $0xd8] sm:$0xff] }
  0xa6   : > { %1487 = vmatprep.subr.bf16.mxu0 %v1486_v55 }
  0xa8   : > { %1265 = vmatmul.mubr.f32.vlgmr.msra.gmra.mrb[0].mxu0 %v344_v34  ;;  %1485 = vmatpush3.bf16.msra.mxu1 %v1482_v51  ;;  %v1506_v34 = vpack.c.bf16 %v619_v33, %v618_v32  ;;  %v757_v32 = vld [vmem:[#allocation7 + $0x178] sm:$0xff] }
  0xa9   : > { %1267 = vmatprep.mubr.f32.mxu0 %v345_v35  ;;  %1489 = vmatpush3.bf16.msra.mxu0 %v1486_v55  ;;  %v620_v35 = vld [vmem:[#allocation7 + $0xe0] sm:$0xff] }
  0xaa   : > { %1491 = vmatprep.subr.bf16.mxu0 %v1490_v57  ;;  %1519 = vmatprep.subr.bf16.mxu1 %v1518_v44 }
  0xac   : > { %1268 = vmatmul.mubr.f32.gmra.mrb[2].mxu0 %v346_v36  ;;  %v621_v36 = vld [vmem:[#allocation7 + $0xe8] sm:$0xff] }
  0xad   : > { %1493 = vmatpush3.bf16.msra.mxu0 %v1490_v57  ;;  %v1510_v37 = vpack.c.bf16 %v621_v36, %v620_v35  ;;  %v876_v35 = vld [vmem:[#allocation8 + $0x8] sm:$0xff]  ;;  %v877_v36 = vld [vmem:[#allocation8 + $0x10] sm:$0xff] }
  0xae   : > { %1495 = vmatprep.subr.bf16.mxu0 %v1494_v25  ;;  %v1554_v39 = vpack.c.bf16 %v878_v38, %v877_v36 }
  0xb1   : > { %1497 = vmatpush3.bf16.msra.mxu0 %v1494_v25 }
  0xb2   : > { %1499 = vmatprep.subr.bf16.mxu0 %v1498_v28 }
  0xb5   : > { %1501 = vmatpush3.bf16.msra.mxu0 %v1498_v28  ;;  %v754_v28 = vld [vmem:[#allocation7 + $0x160] sm:$0xff] }
  0xb6   : > { %1503 = vmatprep.subr.bf16.mxu0 %v1502_v31  ;;  %v1542_v30 = vpack.c.bf16 %v755_v29, %v754_v28 }
  0xb9   : > { %1505 = vmatpush3.bf16.msra.mxu0 %v1502_v31  ;;  %v756_v31 = vld [vmem:[#allocation7 + $0x170] sm:$0xff] }
  0xba   : > { %1507 = vmatprep.subr.bf16.mxu0 %v1506_v34  ;;  %v1546_v33 = vpack.c.bf16 %v757_v32, %v756_v31 }
  0xbd   : > { %1509 = vmatpush3.bf16.msra.mxu0 %v1506_v34  ;;  %v875_v34 = vld [vmem:[#allocation8] sm:$0xff] }
  0xbe   : > { %1511 = vmatprep.subr.bf16.mxu0 %v1510_v37 }
  0xc1   : > { %1513 = vmatpush3.bf16.msra.mxu0 %v1510_v37  ;;  %v1550_v37 = vpack.c.bf16 %v876_v35, %v875_v34 }
  0xc2   : > { %1515 = vmatprep.subr.bf16.mxu0 %v1514_v40 }
  0xc5   : > { %1517 = vmatpush3.bf16.msra.mxu0 %v1514_v40  ;;  %v1121_v40 = vld [vmem:[%s2298_s4 + $0x1] ss:$0 sm:$0xff] }
  0xc6   : > { %1551 = vmatprep.subr.bf16.mxu0 %v1550_v37 }
 0x17b   : > { %v1266_v59 = vpop.f32.mrb[0].mxu0 }
 0x17c   : > { %v442_v60 = vadd.f32 %v1266_v59, %v1118_v58  ;;  %v436_v61 = vpop.f32.mrb[1].mxu0 }
 0x17d   : > { %v437_v62 = vadd.f32 %v1118_v58, %v436_v61 }
 0x17e   : > { %v460_v63 = vmul.f32 0.70710677, %v442_v60  ;;  %v456_v12 = vmul.f32 0.5, %v442_v60 }
 0x17f   : > { %v459_v0 = vmul.f32 0.70710677, %v437_v62  ;;  %v1269_v1 = vpop.f32.mrb[2].mxu0  ;;  %v455_v10 = vmul.f32 0.5, %v437_v62 }
 0x180   : > { %1679 = verf.f32 %v460_v63  ;;  %v452_v2 = vadd.f32 %v1269_v1, %v1118_v58  ;;  %v446_v3 = vpop.f32.mrb[3].mxu0 }
 0x181   : > { %1681 = verf.f32 %v459_v0  ;;  %v447_v4 = vadd.f32 %v1118_v58, %v446_v3 }
 0x182   : > { %v462_v5 = vmul.f32 0.70710677, %v452_v2  ;;  %v458_v20 = vmul.f32 0.5, %v452_v2 }
 0x183   : > { %v461_v6 = vmul.f32 0.70710677, %v447_v4  ;;  %v457_v18 = vmul.f32 0.5, %v447_v4 }
 0x184   : > { %1683 = verf.f32 %v462_v5 }
 0x185   : > { %1685 = verf.f32 %v461_v6 }
 0x18a   : > { %v1680_v7 = vpop.eup %1679 }
 0x18b   : > { %v1682_v8 = vpop.eup %1681  ;;  %v468_v9 = vadd.f32 1.0, %v1680_v7 }
 0x18c   : > { %v467_v11 = vadd.f32 1.0, %v1682_v8 }
 0x18d   : > { %v2184_v17 = vmul.f32 %v468_v9, %v456_v12 }
 0x18e   : > { %v1684_v13 = vpop.eup %1683  ;;  %v2182_v14 = vmul.f32 %v467_v11, %v455_v10 }
 0x18f   : > { %v1686_v15 = vpop.eup %1685  ;;  %v470_v16 = vadd.f32 1.0, %v1684_v13 }
 0x190   : > { %v469_v19 = vadd.f32 1.0, %v1686_v15  ;;  %1302 = vmatprep.mubr.f32.mxu1 %v2182_v14 }
 0x191   : > { %1303 = vmatmul.mubr.f32.vlgmr.msra.gmra.mrb[0].mxu1 %v2184_v17  ;;  %v2190_v22 = vmul.f32 %v470_v16, %v458_v20  ;;  %v749_v20 = vld [vmem:[#allocation7 + $0x138] sm:$0xff] }
 0x192   : > { %v2188_v21 = vmul.f32 %v469_v19, %v457_v18  ;;  %1521 = vmatpush3.bf16.msra.mxu1 %v1518_v44  ;;  %v747_v18 = vld [vmem:[#allocation7 + $0x128] sm:$0xff]  ;;  %v748_v19 = vld [vmem:[#allocation7 + $0x130] sm:$0xff] }
 0x193   : > { %1523 = vmatprep.subr.bf16.mxu1 %v1522_v46  ;;  %v1530_v23 = vpack.c.bf16 %v749_v20, %v748_v19  ;;  %v886_v19 = vld [vmem:[#allocation8 + $0x58] sm:$0xff] }
 0x194   : > { %1305 = vmatprep.mubr.f32.mxu1 %v2188_v21 }
 0x195   : > { %1306 = vmatmul.mubr.f32.gmra.mrb[2].mxu1 %v2190_v22 }
 0x196   : > { %1525 = vmatpush3.bf16.msra.mxu1 %v1522_v46 }
 0x264   : > { %v1304_v48 = vpop.f32.mrb[0].mxu1 }
 0x265   : > { %v570_v49 = vadd.f32 %v1304_v48, %v1119_v47  ;;  %v564_v50 = vpop.f32.mrb[1].mxu1 }
 0x266   : > { %v565_v51 = vadd.f32 %v1119_v47, %v564_v50 }
 0x267   : > { %v588_v52 = vmul.f32 0.70710677, %v570_v49  ;;  %v584_v62 = vmul.f32 0.5, %v570_v49 }
 0x268   : > { %v587_v53 = vmul.f32 0.70710677, %v565_v51  ;;  %v1307_v54 = vpop.f32.mrb[2].mxu1  ;;  %v583_v0 = vmul.f32 0.5, %v565_v51 }
 0x269   : > { %1687 = verf.f32 %v588_v52  ;;  %v580_v55 = vadd.f32 %v1307_v54, %v1119_v47  ;;  %v574_v56 = vpop.f32.mrb[3].mxu1 }
 0x26a   : > { %1689 = verf.f32 %v587_v53  ;;  %v575_v57 = vadd.f32 %v1119_v47, %v574_v56 }
 0x26b   : > { %v590_v58 = vmul.f32 0.70710677, %v580_v55  ;;  %v586_v6 = vmul.f32 0.5, %v580_v55 }
 0x26c   : > { %v589_v59 = vmul.f32 0.70710677, %v575_v57  ;;  %v585_v8 = vmul.f32 0.5, %v575_v57 }
 0x26d   : > { %1691 = verf.f32 %v590_v58 }
 0x26e   : > { %1693 = verf.f32 %v589_v59 }
 0x273   : > { %v1688_v60 = vpop.eup %1687 }
 0x274   : > { %v1690_v61 = vpop.eup %1689  ;;  %v596_v63 = vadd.f32 1.0, %v1688_v60 }
 0x275   : > { %v595_v1 = vadd.f32 1.0, %v1690_v61 }
 0x276   : > { %v600_v2 = vmul.f32 %v596_v63, %v584_v62 }
 0x277   : > { %v1692_v3 = vpop.eup %1691  ;;  %v599_v4 = vmul.f32 %v595_v1, %v583_v0 }
 0x278   : > { %v1694_v5 = vpop.eup %1693  ;;  %v598_v7 = vadd.f32 1.0, %v1692_v3  ;;  %v2201_v11 = vadd.f32 %v600_v2, %v2184_v17 }
 0x279   : > { %v597_v9 = vadd.f32 1.0, %v1694_v5  ;;  %v2198_v10 = vadd.f32 %v599_v4, %v2182_v14  ;;  %v746_v14 = vld [vmem:[#allocation7 + $0x120] sm:$0xff] }
 0x27a   : > { %v602_v12 = vmul.f32 %v598_v7, %v586_v6  ;;  %v1526_v17 = vpack.c.bf16 %v747_v18, %v746_v14  ;;  %v884_v14 = vld [vmem:[#allocation8 + $0x48] sm:$0xff] }
 0x27b   : > { %v601_v13 = vmul.f32 %v597_v9, %v585_v8  ;;  %1340 = vmatprep.mubr.f32.mxu0 %v2198_v10  ;;  %v879_v9 = vld [vmem:[#allocation8 + $0x20] sm:$0xff] }
 0x27c   : > { %1341 = vmatmul.mubr.f32.vlgmr.msra.gmra.mrb[4].mxu0 %v2201_v11  ;;  %v2209_v16 = vadd.f32 %v602_v12, %v2190_v22  ;;  %1527 = vmatprep.subr.bf16.mxu1 %v1526_v17  ;;  %v752_v22 = vld [vmem:[#allocation7 + $0x150] sm:$0xff] }
 0x27d   : > { %v2206_v15 = vadd.f32 %v601_v13, %v2188_v21  ;;  %1529 = vmatpush3.bf16.msra.mxu1 %v1526_v17  ;;  %v751_v21 = vld [vmem:[#allocation7 + $0x148] sm:$0xff]  ;;  %v1538_v27 = vpack.c.bf16 %v753_v26, %v752_v22  ;;  %1553 = vmatpush3.bf16.msra.mxu0 %v1550_v37  ;;  %v881_v12 = vld [vmem:[#allocation8 + $0x30] sm:$0xff]  ;;  %v882_v13 = vld [vmem:[#allocation8 + $0x38] sm:$0xff] }
 0x27e   : > { %1531 = vmatprep.subr.bf16.mxu1 %v1530_v23  ;;  %v1534_v25 = vpack.c.bf16 %v751_v21, %v750_v24  ;;  %1555 = vmatprep.subr.bf16.mxu0 %v1554_v39  ;;  %v885_v17 = vld [vmem:[#allocation8 + $0x50] sm:$0xff]  ;;  %v888_v24 = vld [vmem:[#allocation8 + $0x68] sm:$0xff]  ;;  %v890_v22 = vld [vmem:[#allocation8 + $0x78] sm:$0xff] }
 0x27f   : > { %1343 = vmatprep.mubr.f32.mxu0 %v2206_v15  ;;  %v1570_v20 = vpack.c.bf16 %v886_v19, %v885_v17 }
 0x280   : > { %1344 = vmatmul.mubr.f32.gmra.mrb[6].mxu0 %v2209_v16 }
 0x281   : > { %1533 = vmatpush3.bf16.msra.mxu1 %v1530_v23  ;;  %1557 = vmatpush3.bf16.msra.mxu0 %v1554_v39  ;;  %v887_v23 = vld [vmem:[#allocation8 + $0x60] sm:$0xff] }
 0x282   : > { %1535 = vmatprep.subr.bf16.mxu1 %v1534_v25  ;;  %v1574_v21 = vpack.c.bf16 %v888_v24, %v887_v23 }
 0x285   : > { %1537 = vmatpush3.bf16.msra.mxu1 %v1534_v25  ;;  %v889_v25 = vld [vmem:[#allocation8 + $0x70] sm:$0xff] }
 0x286   : > { %1539 = vmatprep.subr.bf16.mxu1 %v1538_v27  ;;  %v1578_v26 = vpack.c.bf16 %v890_v22, %v889_v25 }
 0x289   : > { %1541 = vmatpush3.bf16.msra.mxu1 %v1538_v27  ;;  %v1123_v27 = vld [vmem:[%s2298_s4 + $0x2] ss:$0 sm:$0xff] }
 0x28a   : > { %1543 = vmatprep.subr.bf16.mxu1 %v1542_v30 }
 0x28d   : > { %1545 = vmatpush3.bf16.msra.mxu1 %v1542_v30 }
 0x28e   : > { %1547 = vmatprep.subr.bf16.mxu1 %v1546_v33 }
 0x291   : > { %1549 = vmatpush3.bf16.msra.mxu1 %v1546_v33 }
 0x292   : > { %1582 = vmatprep.subr.bf16.mxu1 %v1550_v37 }
 0x34f   : > { %v1342_v41 = vpop.f32.mrb[4].mxu0 }
 0x350   : > { %v704_v42 = vadd.f32 %v1342_v41, %v1121_v40  ;;  %v698_v43 = vpop.f32.mrb[5].mxu0 }
 0x351   : > { %v699_v44 = vadd.f32 %v1121_v40, %v698_v43 }
 0x352   : > { %v722_v45 = vmul.f32 0.70710677, %v704_v42  ;;  %v718_v55 = vmul.f32 0.5, %v704_v42 }
 0x353   : > { %v721_v46 = vmul.f32 0.70710677, %v699_v44  ;;  %v1345_v47 = vpop.f32.mrb[6].mxu0  ;;  %v717_v57 = vmul.f32 0.5, %v699_v44 }
 0x354   : > { %1695 = verf.f32 %v722_v45  ;;  %v714_v48 = vadd.f32 %v1345_v47, %v1121_v40  ;;  %v708_v49 = vpop.f32.mrb[7].mxu0 }
 0x355   : > { %1697 = verf.f32 %v721_v46  ;;  %v709_v50 = vadd.f32 %v1121_v40, %v708_v49 }
 0x356   : > { %v724_v51 = vmul.f32 0.70710677, %v714_v48  ;;  %v720_v63 = vmul.f32 0.5, %v714_v48 }
 0x357   : > { %v723_v52 = vmul.f32 0.70710677, %v709_v50  ;;  %v719_v1 = vmul.f32 0.5, %v709_v50 }
 0x358   : > { %1699 = verf.f32 %v724_v51 }
 0x359   : > { %1701 = verf.f32 %v723_v52 }
 0x35e   : > { %v1696_v53 = vpop.eup %1695 }
 0x35f   : > { %v1698_v54 = vpop.eup %1697  ;;  %v730_v56 = vadd.f32 1.0, %v1696_v53 }
 0x360   : > { %v729_v58 = vadd.f32 1.0, %v1698_v54 }
 0x361   : > { %v734_v59 = vmul.f32 %v730_v56, %v718_v55 }
 0x362   : > { %v1700_v60 = vpop.eup %1699  ;;  %v733_v61 = vmul.f32 %v729_v58, %v717_v57 }
 0x363   : > { %v1702_v62 = vpop.eup %1701  ;;  %v732_v0 = vadd.f32 1.0, %v1700_v60  ;;  %v2220_v4 = vadd.f32 %v734_v59, %v2201_v11  ;;  %v1124_v60 = vld [vmem:[%s2300_s6] ss:$0 sm:$0xff] }
 0x364   : > { %v731_v2 = vadd.f32 1.0, %v1702_v62  ;;  %v2217_v3 = vadd.f32 %v733_v61, %v2198_v10  ;;  %v880_v10 = vld [vmem:[#allocation8 + $0x28] sm:$0xff] }
 0x365   : > { %v736_v5 = vmul.f32 %v732_v0, %v720_v63  ;;  %v1558_v11 = vpack.c.bf16 %v880_v10, %v879_v9 }
 0x366   : > { %v735_v6 = vmul.f32 %v731_v2, %v719_v1  ;;  %1378 = vmatprep.mubr.f32.mxu1 %v2217_v3 }
 0x367   : > { %1379 = vmatmul.mubr.f32.vlgmr.msra.gmra.mrb[4].mxu1 %v2220_v4  ;;  %v2228_v8 = vadd.f32 %v736_v5, %v2209_v16  ;;  %1559 = vmatprep.subr.bf16.mxu0 %v1558_v11  ;;  %v883_v16 = vld [vmem:[#allocation8 + $0x40] sm:$0xff] }
 0x368   : > { %v2225_v7 = vadd.f32 %v735_v6, %v2206_v15  ;;  %1590 = vmatpush3.bf16.msra.mxu1 %v1550_v37  ;;  %1561 = vmatpush3.bf16.msra.mxu0 %v1558_v11  ;;  %v1562_v15 = vpack.c.bf16 %v882_v13, %v881_v12  ;;  %v1566_v18 = vpack.c.bf16 %v884_v14, %v883_v16 }
 0x369   : > { %1583 = vmatprep.subr.bf16.mxu1 %v1554_v39 }
 0x36a   : > { %1381 = vmatprep.mubr.f32.mxu1 %v2225_v7  ;;  %1563 = vmatprep.subr.bf16.mxu0 %v1562_v15 }
 0x36b   : > { %1382 = vmatmul.mubr.f32.gmra.mrb[6].mxu1 %v2228_v8 }
 0x36c   : > { %1591 = vmatpush3.bf16.msra.mxu1 %v1554_v39  ;;  %1565 = vmatpush3.bf16.msra.mxu0 %v1562_v15 }
 0x36d   : > { %1584 = vmatprep.subr.bf16.mxu1 %v1558_v11  ;;  %1567 = vmatprep.subr.bf16.mxu0 %v1566_v18 }
 0x370   : > { %1592 = vmatpush3.bf16.msra.mxu1 %v1558_v11  ;;  %1569 = vmatpush3.bf16.msra.mxu0 %v1566_v18 }
 0x371   : > { %1585 = vmatprep.subr.bf16.mxu1 %v1562_v15  ;;  %1571 = vmatprep.subr.bf16.mxu0 %v1570_v20 }
 0x374   : > { %1593 = vmatpush3.bf16.msra.mxu1 %v1562_v15  ;;  %1573 = vmatpush3.bf16.msra.mxu0 %v1570_v20 }
 0x375   : > { %1586 = vmatprep.subr.bf16.mxu1 %v1566_v18  ;;  %1575 = vmatprep.subr.bf16.mxu0 %v1574_v21 }
 0x378   : > { %1594 = vmatpush3.bf16.msra.mxu1 %v1566_v18  ;;  %1577 = vmatpush3.bf16.msra.mxu0 %v1574_v21 }
 0x379   : > { %1587 = vmatprep.subr.bf16.mxu1 %v1570_v20  ;;  %1579 = vmatprep.subr.bf16.mxu0 %v1578_v26 }
 0x37c   : > { %1595 = vmatpush3.bf16.msra.mxu1 %v1570_v20  ;;  %1581 = vmatpush3.bf16.msra.mxu0 %v1578_v26 }
 0x37d   : > { %1588 = vmatprep.subr.bf16.mxu1 %v1574_v21 }
 0x380   : > { %1596 = vmatpush3.bf16.msra.mxu1 %v1574_v21 }
 0x381   : > { %1589 = vmatprep.subr.bf16.mxu1 %v1578_v26 }
 0x384   : > { %1597 = vmatpush3.bf16.msra.mxu1 %v1578_v26 }
 0x43a   : > { %v1380_v28 = vpop.f32.mrb[4].mxu1 }
 0x43b   : > { %v838_v29 = vadd.f32 %v1380_v28, %v1123_v27  ;;  %v832_v30 = vpop.f32.mrb[5].mxu1 }
 0x43c   : > { %v833_v31 = vadd.f32 %v1123_v27, %v832_v30 }
 0x43d   : > { %v856_v32 = vmul.f32 0.70710677, %v838_v29  ;;  %v852_v42 = vmul.f32 0.5, %v838_v29 }
 0x43e   : > { %v855_v33 = vmul.f32 0.70710677, %v833_v31  ;;  %v1383_v34 = vpop.f32.mrb[6].mxu1  ;;  %v851_v44 = vmul.f32 0.5, %v833_v31 }
 0x43f   : > { %1703 = verf.f32 %v856_v32  ;;  %v848_v35 = vadd.f32 %v1383_v34, %v1123_v27  ;;  %v842_v36 = vpop.f32.mrb[7].mxu1 }
 0x440   : > { %1705 = verf.f32 %v855_v33  ;;  %v843_v37 = vadd.f32 %v1123_v27, %v842_v36 }
 0x441   : > { %v858_v38 = vmul.f32 0.70710677, %v848_v35  ;;  %v854_v50 = vmul.f32 0.5, %v848_v35 }
 0x442   : > { %v857_v39 = vmul.f32 0.70710677, %v843_v37  ;;  %v853_v52 = vmul.f32 0.5, %v843_v37 }
 0x443   : > { %1707 = verf.f32 %v858_v38 }
 0x444   : > { %1709 = verf.f32 %v857_v39 }
 0x449   : > { %v1704_v40 = vpop.eup %1703 }
 0x44a   : > { %v1706_v41 = vpop.eup %1705  ;;  %v864_v43 = vadd.f32 1.0, %v1704_v40 }
 0x44b   : > { %v863_v45 = vadd.f32 1.0, %v1706_v41 }
 0x44c   : > { %v868_v46 = vmul.f32 %v864_v43, %v852_v42 }
 0x44d   : > { %v1708_v47 = vpop.eup %1707  ;;  %v867_v48 = vmul.f32 %v863_v45, %v851_v44 }
 0x44e   : > { %v1710_v49 = vpop.eup %1709  ;;  %v866_v51 = vadd.f32 1.0, %v1708_v47  ;;  %v872_v55 = vadd.f32 %v868_v46, %v2220_v4 }
 0x44f   : > { %v865_v53 = vadd.f32 1.0, %v1710_v49  ;;  %v871_v54 = vadd.f32 %v867_v48, %v2217_v3 }
 0x450   : > { %v870_v56 = vmul.f32 %v866_v51, %v854_v50 }
 0x451   : > { %v869_v57 = vmul.f32 %v865_v53, %v853_v52  ;;  %1416 = vmatprep.mubr.f32.mxu0 %v871_v54 }
 0x452   : > { %1417 = vmatmul.mubr.f32.vlgmr.msra.gmra.mrb[8].mxu0 %v872_v55  ;;  %v874_v59 = vadd.f32 %v870_v56, %v2228_v8 }
 0x453   : > { %v873_v58 = vadd.f32 %v869_v57, %v2225_v7 }
 0x455   : > { %1419 = vmatprep.mubr.f32.mxu1 %v873_v58 }
 0x456   : > { %1420 = vmatmul.mubr.f32.vlgmr.msra.gmra.mrb[8].mxu1 %v874_v59 }
 0x525   : > { %v1418_v61 = vpop.f32.mrb[8].mxu0 }
 0x526   : > { %v970_v62 = vadd.f32 %v1418_v61, %v1124_v60  ;;  %v964_v63 = vpop.f32.mrb[9].mxu0 }
 0x527   : > { %v965_v0 = vadd.f32 %v1124_v60, %v964_v63 }
 0x528   : > { %984 = vst [vmem:[%s340_s29 + $0x8] sm:$0xff] %v970_v62 }
 0x529   : > { %983 = vst [vmem:[%s340_s29] sm:$0xff] %v965_v0  ;;  %v1421_v1 = vpop.f32.mrb[8].mxu1 }
 0x52a   : > { %v980_v2 = vadd.f32 %v1421_v1, %v1124_v60  ;;  %v974_v3 = vpop.f32.mrb[9].mxu1 }
 0x52b   : > { %v975_v4 = vadd.f32 %v1124_v60, %v974_v3 }
 0x52c   : > { %986 = vst [vmem:[%s340_s29 + $0x18] sm:$0xff] %v980_v2 }
 0x52d   : > { %985 = vst [vmem:[%s340_s29 + $0x10] sm:$0xff] %v975_v4 }
 0x52e   : > { %1838 = shalt.err (!%p1835_p4)
}
 0x52f   : > { %s1839_s12 = scalar_lea.hbm %s2250_s13, 512  ;;  %s1843_s16 = scalar_lea.hbm %s2301_s7, 1024 }
 0x530   : > { %p1840_p9 = scmp.ne.s32.totalorder %s2250_s13, %s1839_s12  ;;  %p1844_p8 = scmp.lt.u32.totalorder %s2250_s13, %s2301_s7 }
 0x531   : > { %p1845_p13 = scmp.lt.u32.totalorder %s1843_s16, %s1839_s12  ;;  %p1847_p10 = scmp.lt.u32.totalorder %s1839_s12, %s2250_s13 }
 0x532   : > { %p1841_p0 = pnand %p1840_p9, %p2104_p5 }
 0x533   : > { %p1846_p6 = por %p1845_p13, %p1844_p8 }
 0x534   : > { %p1842_p11 = pneg %p1841_p0 }
 0x535   : > { %p1848_p3 = por %p1847_p10, %p1846_p6 }
 0x537   : > { %p1849_p7 = pnand %p1848_p3, %p1842_p11 }
 0x539   : > { %1852 = shalt.err (!%p1849_p7)
}
 0x53a   : > { %s1908_s30 = smov 128   ;;  %s1909_s9 = smov 8  }
 0x53b   : > { %1612 = dma.vmem_to_hbm [thread:$0]  (%p2104_p5), %s2245_s11, 512, %s2250_s13, %s988_s23, %s1908_s30, %s1908_s30, %s1909_s9  }
 0x53c PF: > { %s2321_s28 = sld [smem:[#allocation15_spill]]  ;;  %s1016_s15 = sand.u32 1, %s1887_s24  }
 0x53d   : > { %p2323_p1 = scmp.ge.s32.totalorder %s1899_s27, 2  ;;  %s1017_s10 = scalar_lea.sflag [#allocation4], %s1016_s15 }
 0x542   : > { %p2322_p12 = scmp.ne.s32.totalorder %s2321_s28, 0 }
 0x544   : > { %p1629_p2 = pnand %p2323_p1, %p2322_p12 }
 0x546   : > { %1882 = dma.done.wait (!%p1629_p2), %s1017_s10, 512  }
 0x547   : > { %1884 = vsyncadd (!%p1629_p2), %s1017_s10, 4294966784  ;;  %p22_p4 = scmp.ge.s32.totalorder %s2090_s22, 4   ;;  %s2324_s24 = smov %s1891_s25 }
 0x548   : > { %s2325_s25 = smov %s1895_s26  ;;  %s2326_s26 = smov %s2100_s18 }
 0x549   : > { %s2327_s27 = smov %s2090_s22  ;;  %24 = sbr.rel (!%p22_p4) target bundleno = 7 (0x7), region = 109 }
 0x550   :  { %1022 = vsyncpa [#allocation3], 1 }
 0x551   :  { %1024 = vsyncpa [#allocation3 + $0x1], 1 }
 0x552   :  { %1025 = vsyncpa [#allocation6], 1 }
 0x553   :  { %1026 = vsyncpa [#allocation9], 1 }
 0x554   :  { %1027 = vsyncpa [#allocation4], 1 }
 0x555   :  { %1029 = vsyncpa [#allocation4 + $0x1], 1 }

</bundles_post_ra>
